<compile_context>
chip_gen: v7x
topology: tpu7x:2x2x1
jax: 0.10.0
libtpu: 0.0.40
codegen_flags: <defaults>
</compile_context>

<pallas_src>
import jax
import jax.numpy as jnp
from jax.experimental import pallas as pl
from jax.experimental.pallas import tpu as pltpu


def _round_up(n, m):
    return ((n + m - 1) // m) * m


def _vmem_capacity_bytes():
    try:
        return int(pltpu.get_tpu_info().vmem_capacity_bytes)
    except Exception:
        return 64 * 1024 * 1024  # conservative (v7x per-TC) fallback


def _default_block_b(B):
    kind = ""
    try:
        kind = jax.devices()[0].device_kind.lower()
    except Exception:
        pass
    if "v5" in kind:
        cap = 256    # 4x128 MXU saturates early; lower HBM BW, 1 vst slot
    elif "v6" in kind:
        cap = 1024   # 256x256 MXU + 128 MiB VMEM: big batch tiles win
    else:
        cap = 512    # v7x / unknown: 64 MiB/TC, 2 TCs
    b16 = _round_up(B, 16)
    bb = min(cap, b16)
    # Ensure >=2 grid steps when the batch allows it so the "parallel" batch
    # axis gives both v7x TensorCores work (harmless on v5e/v6e).
    if bb >= b16 and b16 > 16:
        bb = _round_up((b16 + 1) // 2, 16)
    return bb


def _autoencoder_kernel(x_ref,
                        w1_ref, b1_ref,
                        w2_ref, b2_ref,
                        w3_ref, b3_ref,
                        w4_ref, b4_ref,
                        out_ref):
    cdt = w1_ref.dtype          # bf16 compute dtype for the MXU operands
    x = x_ref[...]              # already in the compute dtype (wrapper cast)

    # encoder: Linear(input_dim, hidden) -> ReLU
    h = jnp.dot(x, w1_ref[...], preferred_element_type=jnp.float32) + b1_ref[...]
    h = jnp.maximum(h, 0.0).astype(cdt)

    # encoder: Linear(hidden, hidden // 2) -> ReLU
    h = jnp.dot(h, w2_ref[...], preferred_element_type=jnp.float32) + b2_ref[...]
    h = jnp.maximum(h, 0.0).astype(cdt)

    # decoder: Linear(hidden // 2, hidden) -> ReLU
    h = jnp.dot(h, w3_ref[...], preferred_element_type=jnp.float32) + b3_ref[...]
    h = jnp.maximum(h, 0.0).astype(cdt)

    # decoder: Linear(hidden, input_dim)  (no activation)
    out = jnp.dot(h, w4_ref[...], preferred_element_type=jnp.float32) + b4_ref[...]
    out_ref[...] = out.astype(out_ref.dtype)


def prepare_params(params, compute_dtype=jnp.bfloat16):
    """One-time weight preparation (hoisted out of the forward pass).

    Weights -> compute_dtype (halves weight DMA/VMEM), biases -> (1, out) f32
    for the f32 epilogue."""
    prepared = []
    for (w, b) in params:
        prepared.append((jnp.asarray(w).astype(compute_dtype),
                         jnp.asarray(b).reshape(1, -1).astype(jnp.float32)))
    return tuple(prepared)


def autoencoder_forward(x, prepared_params, *, block_b=None):
    """Fused AutoEncoder.forward. x: (B, input_dim) float; returns (B, input_dim) f32."""
    (w1, b1), (w2, b2), (w3, b3), (w4, b4) = prepared_params
    B, input_dim = x.shape
    hidden = w1.shape[1]
    half = w2.shape[1]
    compute_dtype = w1.dtype

    # Batch tile: multiple of 16 sublanes (bf16 vreg packing).
    if block_b is None:
        block_b = _default_block_b(B)
    block_b = _round_up(int(block_b), 16)
    B_p = _round_up(B, block_b)
    grid = (B_p // block_b,)

    # x: cast to the compute dtype (fuses with upstream scaling under jit)
    # and pad only the batch dim.  Feature dims stay at their logical size.
    x_c = x.astype(compute_dtype)
    if B_p != B:
        x_c = jnp.pad(x_c, ((0, B_p - B), (0, 0)))

    def full_spec(arr):
        # Grid-invariant full-array block (weights/biases stay VMEM-resident).
        return pl.BlockSpec(arr.shape, lambda i: (0, 0))

    weights_and_biases = (w1, b1, w2, b2, w3, b3, w4, b4)
    wgt_bytes = sum(int(a.size) * a.dtype.itemsize for a in weights_and_biases)

    flops = 2 * B_p * (input_dim * hidden + hidden * half
                       + half * hidden + hidden * input_dim)
    bytes_accessed = (int(x_c.size) * x_c.dtype.itemsize      # x in (bf16)
                      + B_p * input_dim * 4                   # out (f32)
                      + wgt_bytes)                            # resident weights

    # Rough VMEM need: double-buffered x/out tiles + (double-buffered) resident
    # weights + live activations; clamp to ~90% of this generation's VMEM.
    cbytes = jnp.dtype(compute_dtype).itemsize
    io_bytes = 2 * block_b * input_dim * (cbytes + 4)
    act_bytes = 6 * block_b * max(input_dim, hidden, half) * 4
    need = 2 * wgt_bytes + io_bytes + act_bytes
    vmem_limit = min(max(int(1.5 * need), 32 * 1024 * 1024),
                     int(0.9 * _vmem_capacity_bytes()))

    out_p = pl.pallas_call(
        _autoencoder_kernel,
        out_shape=jax.ShapeDtypeStruct((B_p, input_dim), jnp.float32),
        grid_spec=pltpu.PrefetchScalarGridSpec(
            num_scalar_prefetch=0,
            grid=grid,
            in_specs=[
                pl.BlockSpec((block_b, input_dim), lambda i: (i, 0)),   # x tile
                full_spec(w1), full_spec(b1),
                full_spec(w2), full_spec(b2),
                full_spec(w3), full_spec(b3),
                full_spec(w4), full_spec(b4),
            ],
            out_specs=pl.BlockSpec((block_b, input_dim), lambda i: (i, 0)),
        ),
        compiler_params=pltpu.CompilerParams(
            dimension_semantics=("parallel",),
            vmem_limit_bytes=int(vmem_limit)),
        cost_estimate=pl.CostEstimate(
            flops=int(flops), transcendentals=0,
            bytes_accessed=int(bytes_accessed)),
    )(x_c, w1, b1, w2, b2, w3, b3, w4, b4)

    return out_p[:B]


def init_params(key, input_dim, hidden_dim):
    """Deterministic PyTorch-style (uniform +/- 1/sqrt(fan_in)) Linear init.

    Weight stored as (in_features, out_features); bias as (1, out)."""
    half = hidden_dim // 2
    dims = [(input_dim, hidden_dim),   # encoder.0
            (hidden_dim, half),        # encoder.2
            (half, hidden_dim),        # decoder.0
            (hidden_dim, input_dim)]   # decoder.2
    params = []
    for (fan_in, fan_out) in dims:
        key, kw, kb = jax.random.split(key, 3)
        bound = 1.0 / jnp.sqrt(fan_in)
        w = jax.random.uniform(kw, (fan_in, fan_out), jnp.float32, -bound, bound)
        b = jax.random.uniform(kb, (1, fan_out), jnp.float32, -bound, bound)
        params.append((w, b))
    return params


def min_max_scaling(x, min_tensor, max_tensor, min_range, max_range):
    # Plain-JAX glue mirroring AutoEncoder.min_max_scaling (only NaN -> 0,
    # matching the PyTorch original; +/-inf from a zero range is not guarded
    # there either).
    x_std = (x - min_tensor) / (max_tensor - min_tensor)
    x_scaled = x_std * (max_range - min_range) + min_range
    return jnp.where(jnp.isnan(x_scaled), 0.0, x_scaled)


def reference_forward(x, params, compute_dtype=jnp.bfloat16):
    """Pure-JAX reference with the same bf16-operand / f32-accumulate recipe."""
    (w1, b1), (w2, b2), (w3, b3), (w4, b4) = params

    def layer(h, w, b, relu):
        y = jnp.dot(h.astype(compute_dtype), w.astype(compute_dtype),
                    preferred_element_type=jnp.float32) + b
        return jnp.maximum(y, 0.0) if relu else y

    h = layer(x, w1, b1, True)
    h = layer(h, w2, b2, True)
    h = layer(h, w3, b3, True)
    return layer(h, w4, b4, False)


if __name__ == "__main__":
    key = jax.random.PRNGKey(0)

    batch = 256
    input_dim = 16
    hidden_dim = 32

    key, kx = jax.random.split(key)
    x = jax.random.normal(kx, (batch, input_dim), jnp.float32)

    params = init_params(key, input_dim, hidden_dim)
    prep = prepare_params(params)          # one-time pad/cast, hoisted out of forward

    min_t = jnp.full((input_dim,), -3.0, jnp.float32)
    max_t = jnp.full((input_dim,), 3.0, jnp.float32)

    @jax.jit
    def predict(xx):
        # predict(): min_max_scaling -> fused Pallas forward -> per-sample MSE.
        xs = min_max_scaling(xx, min_t, max_t, 0.0, 1.0)
        out = autoencoder_forward(xs, prep)
        err = jnp.mean(jnp.square(out - xs), axis=1)
        return out, xs, err

    out, x_scaled, error = predict(x)
    out = jax.block_until_ready(out)

    ref = reference_forward(x_scaled, params)
    assert out.shape == (batch, input_dim)
    assert jnp.allclose(out, ref, atol=5e-3, rtol=5e-3), "mismatch vs reference"

    jax.block_until_ready(error)
    print("KERNEL_OK")
</pallas_src>

<mosaic_0001>
module attributes {stable_mosaic.version = 11 : i64} {
  func.func @_autoencoder_kernel(%arg0: i32, %arg1: memref<128x16xbf16, #tpu.memory_space<vmem>>, %arg2: memref<16x32xbf16, #tpu.memory_space<vmem>>, %arg3: memref<1x32xf32, #tpu.memory_space<vmem>>, %arg4: memref<32x16xbf16, #tpu.memory_space<vmem>>, %arg5: memref<1x16xf32, #tpu.memory_space<vmem>>, %arg6: memref<16x32xbf16, #tpu.memory_space<vmem>>, %arg7: memref<1x32xf32, #tpu.memory_space<vmem>>, %arg8: memref<32x16xbf16, #tpu.memory_space<vmem>>, %arg9: memref<1x16xf32, #tpu.memory_space<vmem>>, %arg10: memref<128x16xf32, #tpu.memory_space<vmem>>) attributes {dimension_semantics = [#tpu.dimension_semantics<parallel>], iteration_bounds = array<i64: 2>, scalar_prefetch = 0 : i64, scratch_operands = 0 : i64, tpu.core_type = #tpu.core_type<tc>, window_params = [{transform_indices = @transform_0, window_bounds = array<i64: 128, 16>}, {pipeline_mode = #tpu.pipeline_mode<synchronous>, transform_indices = @transform_1, window_bounds = array<i64: 16, 32>}, {pipeline_mode = #tpu.pipeline_mode<synchronous>, transform_indices = @transform_2, window_bounds = array<i64: 1, 32>}, {pipeline_mode = #tpu.pipeline_mode<synchronous>, transform_indices = @transform_3, window_bounds = array<i64: 32, 16>}, {pipeline_mode = #tpu.pipeline_mode<synchronous>, transform_indices = @transform_4, window_bounds = array<i64: 1, 16>}, {pipeline_mode = #tpu.pipeline_mode<synchronous>, transform_indices = @transform_5, window_bounds = array<i64: 16, 32>}, {pipeline_mode = #tpu.pipeline_mode<synchronous>, transform_indices = @transform_6, window_bounds = array<i64: 1, 32>}, {pipeline_mode = #tpu.pipeline_mode<synchronous>, transform_indices = @transform_7, window_bounds = array<i64: 32, 16>}, {pipeline_mode = #tpu.pipeline_mode<synchronous>, transform_indices = @transform_8, window_bounds = array<i64: 1, 16>}, {transform_indices = @transform_9, window_bounds = array<i64: 128, 16>}]} {
    %c0 = arith.constant 0 : index
    %c0_0 = arith.constant 0 : index
    %0 = vector.load %arg1[%c0, %c0_0] : memref<128x16xbf16, #tpu.memory_space<vmem>>, vector<128x16xbf16>
    %c0_1 = arith.constant 0 : index
    %c0_2 = arith.constant 0 : index
    %1 = vector.load %arg2[%c0_1, %c0_2] : memref<16x32xbf16, #tpu.memory_space<vmem>>, vector<16x32xbf16>
    %cst = arith.constant dense<0.000000e+00> : vector<128x32xf32>
    %2 = tpu.matmul %0, %1, %cst {dimension_numbers = #tpu.dot_dimension_numbers<[1], [0], [0], [1], [0, 0, 1, 1], [], []>} : vector<128x16xbf16>, vector<16x32xbf16>, vector<128x32xf32> -> vector<128x32xf32>
    %c0_3 = arith.constant 0 : index
    %c0_4 = arith.constant 0 : index
    %3 = vector.load %arg3[%c0_3, %c0_4] : memref<1x32xf32, #tpu.memory_space<vmem>>, vector<1x32xf32>
    %4 = vector.broadcast %3 : vector<1x32xf32> to vector<128x32xf32>
    %5 = arith.addf %2, %4 : vector<128x32xf32>
    %cst_5 = arith.constant 0.000000e+00 : f32
    %6 = vector.broadcast %cst_5 : f32 to vector<128x32xf32>
    %7 = arith.maximumf %5, %6 : vector<128x32xf32>
    %8 = arith.truncf %7 : vector<128x32xf32> to vector<128x32xbf16>
    %c0_6 = arith.constant 0 : index
    %c0_7 = arith.constant 0 : index
    %9 = vector.load %arg4[%c0_6, %c0_7] : memref<32x16xbf16, #tpu.memory_space<vmem>>, vector<32x16xbf16>
    %cst_8 = arith.constant dense<0.000000e+00> : vector<128x16xf32>
    %10 = tpu.matmul %8, %9, %cst_8 {dimension_numbers = #tpu.dot_dimension_numbers<[1], [0], [0], [1], [0, 0, 1, 1], [], []>} : vector<128x32xbf16>, vector<32x16xbf16>, vector<128x16xf32> -> vector<128x16xf32>
    %c0_9 = arith.constant 0 : index
    %c0_10 = arith.constant 0 : index
    %11 = vector.load %arg5[%c0_9, %c0_10] : memref<1x16xf32, #tpu.memory_space<vmem>>, vector<1x16xf32>
    %12 = vector.broadcast %11 : vector<1x16xf32> to vector<128x16xf32>
    %13 = arith.addf %10, %12 : vector<128x16xf32>
    %cst_11 = arith.constant 0.000000e+00 : f32
    %14 = vector.broadcast %cst_11 : f32 to vector<128x16xf32>
    %15 = arith.maximumf %13, %14 : vector<128x16xf32>
    %16 = arith.truncf %15 : vector<128x16xf32> to vector<128x16xbf16>
    %c0_12 = arith.constant 0 : index
    %c0_13 = arith.constant 0 : index
    %17 = vector.load %arg6[%c0_12, %c0_13] : memref<16x32xbf16, #tpu.memory_space<vmem>>, vector<16x32xbf16>
    %cst_14 = arith.constant dense<0.000000e+00> : vector<128x32xf32>
    %18 = tpu.matmul %16, %17, %cst_14 {dimension_numbers = #tpu.dot_dimension_numbers<[1], [0], [0], [1], [0, 0, 1, 1], [], []>} : vector<128x16xbf16>, vector<16x32xbf16>, vector<128x32xf32> -> vector<128x32xf32>
    %c0_15 = arith.constant 0 : index
    %c0_16 = arith.constant 0 : index
    %19 = vector.load %arg7[%c0_15, %c0_16] : memref<1x32xf32, #tpu.memory_space<vmem>>, vector<1x32xf32>
    %20 = vector.broadcast %19 : vector<1x32xf32> to vector<128x32xf32>
    %21 = arith.addf %18, %20 : vector<128x32xf32>
    %cst_17 = arith.constant 0.000000e+00 : f32
    %22 = vector.broadcast %cst_17 : f32 to vector<128x32xf32>
    %23 = arith.maximumf %21, %22 : vector<128x32xf32>
    %24 = arith.truncf %23 : vector<128x32xf32> to vector<128x32xbf16>
    %c0_18 = arith.constant 0 : index
    %c0_19 = arith.constant 0 : index
    %25 = vector.load %arg8[%c0_18, %c0_19] : memref<32x16xbf16, #tpu.memory_space<vmem>>, vector<32x16xbf16>
    %cst_20 = arith.constant dense<0.000000e+00> : vector<128x16xf32>
    %26 = tpu.matmul %24, %25, %cst_20 {dimension_numbers = #tpu.dot_dimension_numbers<[1], [0], [0], [1], [0, 0, 1, 1], [], []>} : vector<128x32xbf16>, vector<32x16xbf16>, vector<128x16xf32> -> vector<128x16xf32>
    %c0_21 = arith.constant 0 : index
    %c0_22 = arith.constant 0 : index
    %27 = vector.load %arg9[%c0_21, %c0_22] : memref<1x16xf32, #tpu.memory_space<vmem>>, vector<1x16xf32>
    %28 = vector.broadcast %27 : vector<1x16xf32> to vector<128x16xf32>
    %29 = arith.addf %26, %28 : vector<128x16xf32>
    %c0_23 = arith.constant 0 : index
    %c0_24 = arith.constant 0 : index
    %30 = vector.load %arg10[%c0_23, %c0_24] : memref<128x16xf32, #tpu.memory_space<vmem>>, vector<128x16xf32>
    tpu.vector_store %arg10[%c0_23, %c0_24], %29 {strides = array<i32>} : memref<128x16xf32, #tpu.memory_space<vmem>>, vector<128x16xf32>,
    return
  }
  func.func @transform_0(%arg0: i32) -> (i32, i32) {
    %c0_i32 = arith.constant 0 : i32
    %c0_i32_0 = arith.constant 0 : i32
    return %arg0, %c0_i32 : i32, i32
  }
  func.func @transform_1(%arg0: i32) -> (i32, i32) {
    %c0_i32 = arith.constant 0 : i32
    %c0_i32_0 = arith.constant 0 : i32
    %c0_i32_1 = arith.constant 0 : i32
    return %c0_i32, %c0_i32_0 : i32, i32
  }
  func.func @transform_2(%arg0: i32) -> (i32, i32) {
    %c0_i32 = arith.constant 0 : i32
    %c0_i32_0 = arith.constant 0 : i32
    %c0_i32_1 = arith.constant 0 : i32
    return %c0_i32, %c0_i32_0 : i32, i32
  }
  func.func @transform_3(%arg0: i32) -> (i32, i32) {
    %c0_i32 = arith.constant 0 : i32
    %c0_i32_0 = arith.constant 0 : i32
    %c0_i32_1 = arith.constant 0 : i32
    return %c0_i32, %c0_i32_0 : i32, i32
  }
  func.func @transform_4(%arg0: i32) -> (i32, i32) {
    %c0_i32 = arith.constant 0 : i32
    %c0_i32_0 = arith.constant 0 : i32
    %c0_i32_1 = arith.constant 0 : i32
    return %c0_i32, %c0_i32_0 : i32, i32
  }
  func.func @transform_5(%arg0: i32) -> (i32, i32) {
    %c0_i32 = arith.constant 0 : i32
    %c0_i32_0 = arith.constant 0 : i32
    %c0_i32_1 = arith.constant 0 : i32
    return %c0_i32, %c0_i32_0 : i32, i32
  }
  func.func @transform_6(%arg0: i32) -> (i32, i32) {
    %c0_i32 = arith.constant 0 : i32
    %c0_i32_0 = arith.constant 0 : i32
    %c0_i32_1 = arith.constant 0 : i32
    return %c0_i32, %c0_i32_0 : i32, i32
  }
  func.func @transform_7(%arg0: i32) -> (i32, i32) {
    %c0_i32 = arith.constant 0 : i32
    %c0_i32_0 = arith.constant 0 : i32
    %c0_i32_1 = arith.constant 0 : i32
    return %c0_i32, %c0_i32_0 : i32, i32
  }
  func.func @transform_8(%arg0: i32) -> (i32, i32) {
    %c0_i32 = arith.constant 0 : i32
    %c0_i32_0 = arith.constant 0 : i32
    %c0_i32_1 = arith.constant 0 : i32
    return %c0_i32, %c0_i32_0 : i32, i32
  }
  func.func @transform_9(%arg0: i32) -> (i32, i32) {
    %c0_i32 = arith.constant 0 : i32
    %c0_i32_0 = arith.constant 0 : i32
    return %arg0, %c0_i32 : i32, i32
  }
}

</mosaic_0001>

<bundles_post_ra>
// kernel: predict.1
= control target key start
LH: loop header
LB: loop body
LE: loop exit
PB: predicated region body
PF: predicated region fallthrough
CT: control target
= control target key end

     0   :  { %s1354_s30 = smov 0   ;;  %s1471_s0 = inlined_call_operand.vmem [shape: bf16[256,16], index: 0, kind: input, shape index: {}]   ;;  %s1472_s1 = inlined_call_operand.vmem [shape: bf16[16,32], index: 1, kind: input, shape index: {}]   ;;  %s1473_s2 = inlined_call_operand.vmem [shape: f32[1,32], index: 2, kind: input, shape index: {}]   ;;  %s1474_s3 = inlined_call_operand.vmem [shape: bf16[32,16], index: 3, kind: input, shape index: {}]   ;;  %s1475_s4 = inlined_call_operand.vmem [shape: f32[1,16], index: 4, kind: input, shape index: {}]   ;;  %s1476_s5 = inlined_call_operand.vmem [shape: bf16[16,32], index: 5, kind: input, shape index: {}]   ;;  %s1477_s6 = inlined_call_operand.vmem [shape: f32[1,32], index: 6, kind: input, shape index: {}]   ;;  %s1478_s7 = inlined_call_operand.vmem [shape: bf16[32,16], index: 7, kind: input, shape index: {}]   ;;  %s1479_s8 = inlined_call_operand.vmem [shape: f32[1,16], index: 8, kind: input, shape index: {}]   ;;  %s1480_s9 = inlined_call_operand.vmem [shape: f32[256,16], index: 9, kind: output, shape index: {}]  }
   0x1 LB: > { %s1099_s10 = sadd.s32 4294967295, %s1302_s30   ;;  %p1103_p0 = scmp.ge.s32.totalorder %s1302_s30, 1  ;;  %s1302_s30 = sphi %s1354_s30, %s19_s30  }
   0x2   : > { %p288_p1 = scmp.lt.s32.totalorder %s1302_s30, 3 }
   0x4   : > { %p289_p2 = pnand %p1103_p0, %p288_p1 }
   0x5   : > { %v1282_v0 = vld [vmem:[%s1472_s1] sm:$0xff] (!%p289_p2)   ;;  %s1104_s13 = sshll.u32 (!%p289_p2), %s1099_s10, 4  ;;  %vm408_vm0 = vcmask (!%p289_p2), 130048   ;;  %v1292_v10 = vld [vmem:[%s1474_s3 + $0x8] sm:$0xff] (!%p289_p2)   ;;  %vm577_vm1 = vcmask (!%p289_p2), 261120  }
   0x6   : > { %292 = sbr.rel (%p289_p2) target bundleno = 926 (0x39e), region = 56  ;;  %p325_p3 = scmp.lt.s32.totalorder (!%p289_p2), %s1104_s13, 31  ;;  %1198 = vmatprep.subr.bf16.mxu0 (!%p289_p2), %v1282_v0  ;;  %v1291_v9 = vld [vmem:[%s1474_s3] sm:$0xff] (!%p289_p2)  }
   0x7   : > { %1199 = vmatpush3.bf16.msra.mxu0 (!%p289_p2), %v1282_v0  ;;  %1216 = vmatprep.subr.bf16.mxu1 (!%p289_p2), %v1291_v9  ;;  %v1293_v11 = vld [vmem:[%s1476_s5] sm:$0xff] (!%p289_p2)  }
   0x8   : > { %1217 = vmatpush3.bf16.msra.mxu1 (!%p289_p2), %v1291_v9  ;;  %1236 = vmatprep.subr.bf16.mxu0 (!%p289_p2), %v1293_v11  ;;  %v1108_v12 = vld [vmem:[%s1473_s2] ss:$0 sm:$0xff] (!%p289_p2) }
   0x9   : > { %1218 = vmatprep.subr.bf16.mxu1 (!%p289_p2), %v1292_v10 }
   0xc   : > { %1219 = vmatpush3.bf16.msra.mxu1 (!%p289_p2), %v1292_v10 }
   0xd   : > { %s1482_s13 = smov (!%p325_p3, %s1104_s13), 31 }
   0xe   : > { %s1105_s14 = sshll.u32 %s1482_s13, 2  ;;  %s1107_s15 = sshll.u32 %s1482_s13, 3 }
   0xf   : > { %s328_s17 = scalar_lea.vmem %s1471_s0, %s1105_s14  ;;  %s1434_s20 = scalar_lea.vmem %s1480_s9, %s1107_s15 }
  0x10   : > { %v1283_v1 = vld [vmem:[%s328_s17] sm:$0xff]   ;;  %v1284_v2 = vld [vmem:[%s328_s17 + $0x8] sm:$0xff]   ;;  %v1285_v3 = vld [vmem:[%s328_s17 + $0x10] sm:$0xff]  }
  0x11   : > { %1200 = vmatprep.mubr.msk.bf16.mxu0 %vm408_vm0, %v1283_v1  ;;  %v1286_v4 = vld [vmem:[%s328_s17 + $0x18] sm:$0xff]   ;;  %v1287_v5 = vld [vmem:[%s328_s17 + $0x20] sm:$0xff]   ;;  %v1288_v6 = vld [vmem:[%s328_s17 + $0x28] sm:$0xff]  }
  0x12   : > { %1201 = vmatmul.mubr.msk.bf16.vlgmr.msra.gmra.mrb[0].mxu0 %vm408_vm0, %v1284_v2  ;;  %v1289_v7 = vld [vmem:[%s328_s17 + $0x30] sm:$0xff]   ;;  %v1290_v8 = vld [vmem:[%s328_s17 + $0x38] sm:$0xff]  }
  0x13   : > { %1204 = vmatprep.mubr.msk.bf16.mxu0 %vm408_vm0, %v1285_v3  ;;  %1237 = vmatpush3.bf16.msra.mxu0 %v1293_v11 }
  0x1a   : > { %1205 = vmatmul.mubr.msk.bf16.gmra.mrb[4].mxu0 %vm408_vm0, %v1286_v4 }
  0x1b   : > { %1208 = vmatprep.mubr.msk.bf16.mxu0 %vm408_vm0, %v1287_v5  ;;  %v1294_v5 = vld [vmem:[%s1478_s7] sm:$0xff]  }
  0x1c   : > { %1254 = vmatprep.subr.bf16.mxu1 %v1294_v5 }
  0x22   : > { %1209 = vmatmul.mubr.msk.bf16.gmra.mrb[8].mxu0 %vm408_vm0, %v1288_v6  ;;  %v1295_v6 = vld [vmem:[%s1478_s7 + $0x8] sm:$0xff]  }
  0x23   : > { %1212 = vmatprep.mubr.msk.bf16.mxu0 %vm408_vm0, %v1289_v7  ;;  %v1126_v7 = vld [vmem:[%s1475_s4] ss:$0 sm:$0xff] }
  0x2a   : > { %1213 = vmatmul.mubr.msk.bf16.gmra.mrb[12].mxu0 %vm408_vm0, %v1290_v8 }
  0xe5   : > { %v1202_v13 = vpop.f32.mrb[0].mxu0 }
  0xe6   : > { %v476_v14 = vadd.f32 %v1202_v13, %v1108_v12  ;;  %v467_v15 = vpop.f32.mrb[1].mxu0 }
  0xe7   : > { %v468_v16 = vadd.f32 %v1108_v12, %v467_v15  ;;  %v1203_v17 = vpop.f32.mrb[2].mxu0 }
  0xe8   : > { %v479_v18 = vadd.f32 %v1203_v17, %v1108_v12  ;;  %v470_v19 = vpop.f32.mrb[3].mxu0  ;;  %v532_v21 = vmax.f32 %v476_v14, 0.0 }
  0xe9   : > { %v471_v20 = vadd.f32 %v1108_v12, %v470_v19  ;;  %v530_v23 = vmax.f32 %v468_v16, 0.0 }
  0xea   : > { %v533_v22 = vmax.f32 %v479_v18, 0.0 }
  0xeb   : > { %v531_v24 = vmax.f32 %v471_v20, 0.0 }
  0xec   : > { %v547_v25 = vpack.c.bf16 %v533_v22, %v532_v21 }
  0xed   : > { %v1206_v26 = vpop.f32.mrb[4].mxu0  ;;  %v546_v27 = vpack.c.bf16 %v531_v24, %v530_v23 }
  0xee   : > { %v492_v28 = vadd.f32 %v1206_v26, %v1108_v12  ;;  %v483_v29 = vpop.f32.mrb[5].mxu0 }
  0xef   : > { %v484_v30 = vadd.f32 %v1108_v12, %v483_v29  ;;  %v1207_v31 = vpop.f32.mrb[6].mxu0  ;;  %1220 = vmatprep.mubr.msk.bf16.mxu1 %vm577_vm1, %v546_v27 }
  0xf0   : > { %v495_v32 = vadd.f32 %v1207_v31, %v1108_v12  ;;  %v486_v33 = vpop.f32.mrb[7].mxu0  ;;  %1221 = vmatmul.mubr.msk.bf16.vlgmr.msra.gmra.mrb[0].mxu1 %vm577_vm1, %v547_v25  ;;  %v536_v35 = vmax.f32 %v492_v28, 0.0 }
  0xf1   : > { %v487_v34 = vadd.f32 %v1108_v12, %v486_v33  ;;  %v534_v37 = vmax.f32 %v484_v30, 0.0  ;;  %1255 = vmatpush3.bf16.msra.mxu1 %v1294_v5 }
  0xf2   : > { %v537_v36 = vmax.f32 %v495_v32, 0.0  ;;  %1256 = vmatprep.subr.bf16.mxu1 %v1295_v6 }
  0xf3   : > { %v535_v38 = vmax.f32 %v487_v34, 0.0 }
  0xf4   : > { %v549_v39 = vpack.c.bf16 %v537_v36, %v536_v35 }
  0xf5   : > { %v548_v40 = vpack.c.bf16 %v535_v38, %v534_v37  ;;  %v1210_v41 = vpop.f32.mrb[8].mxu0  ;;  %1257 = vmatpush3.bf16.msra.mxu1 %v1295_v6 }
  0xf6   : > { %v508_v42 = vadd.f32 %v1210_v41, %v1108_v12  ;;  %v499_v43 = vpop.f32.mrb[9].mxu0 }
  0xf7   : > { %v500_v44 = vadd.f32 %v1108_v12, %v499_v43  ;;  %v1211_v45 = vpop.f32.mrb[10].mxu0  ;;  %1224 = vmatprep.mubr.msk.bf16.mxu1 %vm577_vm1, %v548_v40 }
  0xf8   : > { %v511_v46 = vadd.f32 %v1211_v45, %v1108_v12  ;;  %v502_v47 = vpop.f32.mrb[11].mxu0  ;;  %1225 = vmatmul.mubr.msk.bf16.gmra.mrb[4].mxu1 %vm577_vm1, %v549_v39  ;;  %v540_v49 = vmax.f32 %v508_v42, 0.0 }
  0xf9   : > { %v503_v48 = vadd.f32 %v1108_v12, %v502_v47  ;;  %v538_v51 = vmax.f32 %v500_v44, 0.0 }
  0xfa   : > { %v541_v50 = vmax.f32 %v511_v46, 0.0 }
  0xfb   : > { %v539_v52 = vmax.f32 %v503_v48, 0.0 }
  0xfc   : > { %v551_v53 = vpack.c.bf16 %v541_v50, %v540_v49 }
  0xfd   : > { %v550_v54 = vpack.c.bf16 %v539_v52, %v538_v51  ;;  %v1214_v55 = vpop.f32.mrb[12].mxu0 }
  0xfe   : > { %v524_v56 = vadd.f32 %v1214_v55, %v1108_v12  ;;  %v515_v57 = vpop.f32.mrb[13].mxu0 }
  0xff   : > { %v516_v58 = vadd.f32 %v1108_v12, %v515_v57  ;;  %v1215_v59 = vpop.f32.mrb[14].mxu0  ;;  %1228 = vmatprep.mubr.msk.bf16.mxu1 %vm577_vm1, %v550_v54 }
 0x100   : > { %v527_v60 = vadd.f32 %v1215_v59, %v1108_v12  ;;  %v518_v61 = vpop.f32.mrb[15].mxu0  ;;  %1229 = vmatmul.mubr.msk.bf16.gmra.mrb[8].mxu1 %vm577_vm1, %v551_v53  ;;  %v544_v63 = vmax.f32 %v524_v56, 0.0 }
 0x101   : > { %v519_v62 = vadd.f32 %v1108_v12, %v518_v61  ;;  %v542_v1 = vmax.f32 %v516_v58, 0.0 }
 0x102   : > { %v545_v0 = vmax.f32 %v527_v60, 0.0 }
 0x103   : > { %v543_v2 = vmax.f32 %v519_v62, 0.0 }
 0x104   : > { %v553_v3 = vpack.c.bf16 %v545_v0, %v544_v63  ;;  %v1137_v0 = vld [vmem:[%s1477_s6] ss:$0 sm:$0xff] }
 0x105   : > { %v552_v4 = vpack.c.bf16 %v543_v2, %v542_v1 }
 0x107   : > { %1232 = vmatprep.mubr.msk.bf16.mxu1 %vm577_vm1, %v552_v4 }
 0x108   : > { %1233 = vmatmul.mubr.msk.bf16.gmra.mrb[12].mxu1 %vm577_vm1, %v553_v3 }
 0x1c3   : > { %v1222_v8 = vpop.f32.mrb[0].mxu1 }
 0x1c4   : > { %v645_v9 = vadd.f32 %v1222_v8, %v1126_v7  ;;  %v636_v10 = vpop.f32.mrb[1].mxu1 }
 0x1c5   : > { %v637_v11 = vadd.f32 %v1126_v7, %v636_v10  ;;  %v1223_v12 = vpop.f32.mrb[2].mxu1 }
 0x1c6   : > { %v648_v13 = vadd.f32 %v1223_v12, %v1126_v7  ;;  %v639_v14 = vpop.f32.mrb[3].mxu1  ;;  %v701_v16 = vmax.f32 %v645_v9, 0.0 }
 0x1c7   : > { %v640_v15 = vadd.f32 %v1126_v7, %v639_v14  ;;  %v699_v18 = vmax.f32 %v637_v11, 0.0 }
 0x1c8   : > { %v702_v17 = vmax.f32 %v648_v13, 0.0 }
 0x1c9   : > { %v700_v19 = vmax.f32 %v640_v15, 0.0 }
 0x1ca   : > { %v716_v20 = vpack.c.bf16 %v702_v17, %v701_v16 }
 0x1cb   : > { %v715_v21 = vpack.c.bf16 %v700_v19, %v699_v18  ;;  %v1226_v22 = vpop.f32.mrb[4].mxu1 }
 0x1cc   : > { %v661_v23 = vadd.f32 %v1226_v22, %v1126_v7  ;;  %v652_v24 = vpop.f32.mrb[5].mxu1 }
 0x1cd   : > { %v653_v25 = vadd.f32 %v1126_v7, %v652_v24  ;;  %v1227_v26 = vpop.f32.mrb[6].mxu1  ;;  %1238 = vmatprep.mubr.msk.bf16.mxu0 %vm408_vm0, %v715_v21 }
 0x1ce   : > { %v664_v27 = vadd.f32 %v1227_v26, %v1126_v7  ;;  %v655_v28 = vpop.f32.mrb[7].mxu1  ;;  %1239 = vmatmul.mubr.msk.bf16.vlgmr.msra.gmra.mrb[16].mxu0 %vm408_vm0, %v716_v20  ;;  %v705_v30 = vmax.f32 %v661_v23, 0.0 }
 0x1cf   : > { %v656_v29 = vadd.f32 %v1126_v7, %v655_v28  ;;  %v703_v32 = vmax.f32 %v653_v25, 0.0 }
 0x1d0   : > { %v706_v31 = vmax.f32 %v664_v27, 0.0 }
 0x1d1   : > { %v704_v33 = vmax.f32 %v656_v29, 0.0 }
 0x1d2   : > { %v718_v34 = vpack.c.bf16 %v706_v31, %v705_v30 }
 0x1d3   : > { %v717_v35 = vpack.c.bf16 %v704_v33, %v703_v32  ;;  %v1230_v36 = vpop.f32.mrb[8].mxu1 }
 0x1d4   : > { %v677_v37 = vadd.f32 %v1230_v36, %v1126_v7  ;;  %v668_v38 = vpop.f32.mrb[9].mxu1 }
 0x1d5   : > { %v669_v39 = vadd.f32 %v1126_v7, %v668_v38  ;;  %v1231_v40 = vpop.f32.mrb[10].mxu1  ;;  %1242 = vmatprep.mubr.msk.bf16.mxu0 %vm408_vm0, %v717_v35 }
 0x1d6   : > { %v680_v41 = vadd.f32 %v1231_v40, %v1126_v7  ;;  %v671_v42 = vpop.f32.mrb[11].mxu1  ;;  %1243 = vmatmul.mubr.msk.bf16.gmra.mrb[20].mxu0 %vm408_vm0, %v718_v34  ;;  %v709_v44 = vmax.f32 %v677_v37, 0.0 }
 0x1d7   : > { %v672_v43 = vadd.f32 %v1126_v7, %v671_v42  ;;  %v707_v46 = vmax.f32 %v669_v39, 0.0 }
 0x1d8   : > { %v710_v45 = vmax.f32 %v680_v41, 0.0 }
 0x1d9   : > { %v708_v47 = vmax.f32 %v672_v43, 0.0 }
 0x1da   : > { %v720_v48 = vpack.c.bf16 %v710_v45, %v709_v44 }
 0x1db   : > { %v719_v49 = vpack.c.bf16 %v708_v47, %v707_v46  ;;  %v1234_v50 = vpop.f32.mrb[12].mxu1 }
 0x1dc   : > { %v693_v51 = vadd.f32 %v1234_v50, %v1126_v7  ;;  %v684_v52 = vpop.f32.mrb[13].mxu1 }
 0x1dd   : > { %v685_v53 = vadd.f32 %v1126_v7, %v684_v52  ;;  %v1235_v54 = vpop.f32.mrb[14].mxu1  ;;  %1246 = vmatprep.mubr.msk.bf16.mxu0 %vm408_vm0, %v719_v49 }
 0x1de   : > { %v696_v55 = vadd.f32 %v1235_v54, %v1126_v7  ;;  %v687_v56 = vpop.f32.mrb[15].mxu1  ;;  %1247 = vmatmul.mubr.msk.bf16.gmra.mrb[24].mxu0 %vm408_vm0, %v720_v48  ;;  %v713_v58 = vmax.f32 %v693_v51, 0.0 }
 0x1df   : > { %v688_v57 = vadd.f32 %v1126_v7, %v687_v56  ;;  %v711_v60 = vmax.f32 %v685_v53, 0.0 }
 0x1e0   : > { %v714_v59 = vmax.f32 %v696_v55, 0.0 }
 0x1e1   : > { %v712_v61 = vmax.f32 %v688_v57, 0.0  ;;  %v1147_v57 = vld [vmem:[%s1479_s8] ss:$0 sm:$0xff] }
 0x1e2   : > { %v722_v62 = vpack.c.bf16 %v714_v59, %v713_v58 }
 0x1e3   : > { %v721_v63 = vpack.c.bf16 %v712_v61, %v711_v60 }
 0x1e5   : > { %1250 = vmatprep.mubr.msk.bf16.mxu0 %vm408_vm0, %v721_v63 }
 0x1e6   : > { %1251 = vmatmul.mubr.msk.bf16.gmra.mrb[28].mxu0 %vm408_vm0, %v722_v62 }
 0x2a1   : > { %v1240_v1 = vpop.f32.mrb[16].mxu0 }
 0x2a2   : > { %v805_v2 = vadd.f32 %v1240_v1, %v1137_v0  ;;  %v796_v3 = vpop.f32.mrb[17].mxu0 }
 0x2a3   : > { %v797_v4 = vadd.f32 %v1137_v0, %v796_v3  ;;  %v1241_v5 = vpop.f32.mrb[18].mxu0 }
 0x2a4   : > { %v808_v6 = vadd.f32 %v1241_v5, %v1137_v0  ;;  %v799_v7 = vpop.f32.mrb[19].mxu0  ;;  %v861_v9 = vmax.f32 %v805_v2, 0.0 }
 0x2a5   : > { %v800_v8 = vadd.f32 %v1137_v0, %v799_v7  ;;  %v859_v11 = vmax.f32 %v797_v4, 0.0 }
 0x2a6   : > { %v862_v10 = vmax.f32 %v808_v6, 0.0 }
 0x2a7   : > { %v860_v12 = vmax.f32 %v800_v8, 0.0 }
 0x2a8   : > { %v876_v13 = vpack.c.bf16 %v862_v10, %v861_v9 }
 0x2a9   : > { %v875_v14 = vpack.c.bf16 %v860_v12, %v859_v11  ;;  %v1244_v15 = vpop.f32.mrb[20].mxu0 }
 0x2aa   : > { %v821_v16 = vadd.f32 %v1244_v15, %v1137_v0  ;;  %v812_v17 = vpop.f32.mrb[21].mxu0 }
 0x2ab   : > { %v813_v18 = vadd.f32 %v1137_v0, %v812_v17  ;;  %v1245_v19 = vpop.f32.mrb[22].mxu0  ;;  %1258 = vmatprep.mubr.msk.bf16.mxu1 %vm577_vm1, %v875_v14 }
 0x2ac   : > { %v824_v20 = vadd.f32 %v1245_v19, %v1137_v0  ;;  %v815_v21 = vpop.f32.mrb[23].mxu0  ;;  %1259 = vmatmul.mubr.msk.bf16.vlgmr.msra.gmra.mrb[16].mxu1 %vm577_vm1, %v876_v13  ;;  %v865_v23 = vmax.f32 %v821_v16, 0.0 }
 0x2ad   : > { %v816_v22 = vadd.f32 %v1137_v0, %v815_v21  ;;  %v863_v25 = vmax.f32 %v813_v18, 0.0 }
 0x2ae   : > { %v866_v24 = vmax.f32 %v824_v20, 0.0 }
 0x2af   : > { %v864_v26 = vmax.f32 %v816_v22, 0.0 }
 0x2b0   : > { %v878_v27 = vpack.c.bf16 %v866_v24, %v865_v23 }
 0x2b1   : > { %v877_v28 = vpack.c.bf16 %v864_v26, %v863_v25  ;;  %v1248_v29 = vpop.f32.mrb[24].mxu0 }
 0x2b2   : > { %v837_v30 = vadd.f32 %v1248_v29, %v1137_v0  ;;  %v828_v31 = vpop.f32.mrb[25].mxu0 }
 0x2b3   : > { %v829_v32 = vadd.f32 %v1137_v0, %v828_v31  ;;  %v1249_v33 = vpop.f32.mrb[26].mxu0  ;;  %1262 = vmatprep.mubr.msk.bf16.mxu1 %vm577_vm1, %v877_v28 }
 0x2b4   : > { %v840_v34 = vadd.f32 %v1249_v33, %v1137_v0  ;;  %v831_v35 = vpop.f32.mrb[27].mxu0  ;;  %1263 = vmatmul.mubr.msk.bf16.gmra.mrb[20].mxu1 %vm577_vm1, %v878_v27  ;;  %v869_v37 = vmax.f32 %v837_v30, 0.0 }
 0x2b5   : > { %v832_v36 = vadd.f32 %v1137_v0, %v831_v35  ;;  %v867_v39 = vmax.f32 %v829_v32, 0.0 }
 0x2b6   : > { %v870_v38 = vmax.f32 %v840_v34, 0.0 }
 0x2b7   : > { %v868_v40 = vmax.f32 %v832_v36, 0.0 }
 0x2b8   : > { %v880_v41 = vpack.c.bf16 %v870_v38, %v869_v37 }
 0x2b9   : > { %v879_v42 = vpack.c.bf16 %v868_v40, %v867_v39  ;;  %v1252_v43 = vpop.f32.mrb[28].mxu0 }
 0x2ba   : > { %v853_v44 = vadd.f32 %v1252_v43, %v1137_v0  ;;  %v844_v45 = vpop.f32.mrb[29].mxu0 }
 0x2bb   : > { %v845_v46 = vadd.f32 %v1137_v0, %v844_v45  ;;  %v1253_v47 = vpop.f32.mrb[30].mxu0  ;;  %1266 = vmatprep.mubr.msk.bf16.mxu1 %vm577_vm1, %v879_v42 }
 0x2bc   : > { %v856_v48 = vadd.f32 %v1253_v47, %v1137_v0  ;;  %v847_v49 = vpop.f32.mrb[31].mxu0  ;;  %1267 = vmatmul.mubr.msk.bf16.gmra.mrb[24].mxu1 %vm577_vm1, %v880_v41  ;;  %v873_v51 = vmax.f32 %v853_v44, 0.0 }
 0x2bd   : > { %v848_v50 = vadd.f32 %v1137_v0, %v847_v49  ;;  %v871_v53 = vmax.f32 %v845_v46, 0.0 }
 0x2be   : > { %v874_v52 = vmax.f32 %v856_v48, 0.0 }
 0x2bf   : > { %v872_v54 = vmax.f32 %v848_v50, 0.0 }
 0x2c0   : > { %v882_v55 = vpack.c.bf16 %v874_v52, %v873_v51 }
 0x2c1   : > { %v881_v56 = vpack.c.bf16 %v872_v54, %v871_v53 }
 0x2c3   : > { %1270 = vmatprep.mubr.msk.bf16.mxu1 %vm577_vm1, %v881_v56 }
 0x2c4   : > { %1271 = vmatmul.mubr.msk.bf16.gmra.mrb[28].mxu1 %vm577_vm1, %v882_v55 }
 0x37f   : > { %v1260_v58 = vpop.f32.mrb[16].mxu1 }
 0x380   : > { %v973_v59 = vadd.f32 %v1260_v58, %v1147_v57  ;;  %v964_v60 = vpop.f32.mrb[17].mxu1 }
 0x381   : > { %v965_v61 = vadd.f32 %v1147_v57, %v964_v60  ;;  %v1261_v62 = vpop.f32.mrb[18].mxu1 }
 0x382   : > { %1029 = vst.msk [vmem:[%s1434_s20 + $0x10] sm:$0xff] %vm408_vm0, %v973_v59  ;;  %v976_v63 = vadd.f32 %v1261_v62, %v1147_v57  ;;  %v967_v0 = vpop.f32.mrb[19].mxu1 }
 0x383   : > { %1027 = vst.msk [vmem:[%s1434_s20] sm:$0xff] %vm408_vm0, %v965_v61  ;;  %v968_v1 = vadd.f32 %v1147_v57, %v967_v0 }
 0x384   : > { %1030 = vst.msk [vmem:[%s1434_s20 + $0x18] sm:$0xff] %vm408_vm0, %v976_v63 }
 0x385   : > { %1028 = vst.msk [vmem:[%s1434_s20 + $0x8] sm:$0xff] %vm408_vm0, %v968_v1 }
 0x387   : > { %v1264_v2 = vpop.f32.mrb[20].mxu1 }
 0x388   : > { %v989_v3 = vadd.f32 %v1264_v2, %v1147_v57  ;;  %v980_v4 = vpop.f32.mrb[21].mxu1 }
 0x389   : > { %v981_v5 = vadd.f32 %v1147_v57, %v980_v4  ;;  %v1265_v6 = vpop.f32.mrb[22].mxu1 }
 0x38a   : > { %1033 = vst.msk [vmem:[%s1434_s20 + $0x30] sm:$0xff] %vm408_vm0, %v989_v3  ;;  %v992_v7 = vadd.f32 %v1265_v6, %v1147_v57  ;;  %v983_v8 = vpop.f32.mrb[23].mxu1 }
 0x38b   : > { %1031 = vst.msk [vmem:[%s1434_s20 + $0x20] sm:$0xff] %vm408_vm0, %v981_v5  ;;  %v984_v9 = vadd.f32 %v1147_v57, %v983_v8 }
 0x38c   : > { %1034 = vst.msk [vmem:[%s1434_s20 + $0x38] sm:$0xff] %vm408_vm0, %v992_v7 }
 0x38d   : > { %1032 = vst.msk [vmem:[%s1434_s20 + $0x28] sm:$0xff] %vm408_vm0, %v984_v9 }
 0x38f   : > { %v1268_v10 = vpop.f32.mrb[24].mxu1 }
 0x390   : > { %v1005_v11 = vadd.f32 %v1268_v10, %v1147_v57  ;;  %v996_v12 = vpop.f32.mrb[25].mxu1 }
 0x391   : > { %v997_v13 = vadd.f32 %v1147_v57, %v996_v12  ;;  %v1269_v14 = vpop.f32.mrb[26].mxu1 }
 0x392   : > { %1037 = vst.msk [vmem:[%s1434_s20 + $0x50] sm:$0xff] %vm408_vm0, %v1005_v11  ;;  %v1008_v15 = vadd.f32 %v1269_v14, %v1147_v57  ;;  %v999_v16 = vpop.f32.mrb[27].mxu1 }
 0x393   : > { %1035 = vst.msk [vmem:[%s1434_s20 + $0x40] sm:$0xff] %vm408_vm0, %v997_v13  ;;  %v1000_v17 = vadd.f32 %v1147_v57, %v999_v16 }
 0x394   : > { %1038 = vst.msk [vmem:[%s1434_s20 + $0x58] sm:$0xff] %vm408_vm0, %v1008_v15 }
 0x395   : > { %1036 = vst.msk [vmem:[%s1434_s20 + $0x48] sm:$0xff] %vm408_vm0, %v1000_v17 }
 0x397   : > { %v1272_v18 = vpop.f32.mrb[28].mxu1 }
 0x398   : > { %v1021_v19 = vadd.f32 %v1272_v18, %v1147_v57  ;;  %v1012_v20 = vpop.f32.mrb[29].mxu1 }
 0x399   : > { %v1013_v21 = vadd.f32 %v1147_v57, %v1012_v20  ;;  %v1273_v22 = vpop.f32.mrb[30].mxu1 }
 0x39a   : > { %1041 = vst.msk [vmem:[%s1434_s20 + $0x70] sm:$0xff] %vm408_vm0, %v1021_v19  ;;  %v1024_v23 = vadd.f32 %v1273_v22, %v1147_v57  ;;  %v1015_v24 = vpop.f32.mrb[31].mxu1 }
 0x39b   : > { %1039 = vst.msk [vmem:[%s1434_s20 + $0x60] sm:$0xff] %vm408_vm0, %v1013_v21  ;;  %v1016_v25 = vadd.f32 %v1147_v57, %v1015_v24 }
 0x39c   : > { %1042 = vst.msk [vmem:[%s1434_s20 + $0x78] sm:$0xff] %vm408_vm0, %v1024_v23 }
 0x39d   : > { %1040 = vst.msk [vmem:[%s1434_s20 + $0x68] sm:$0xff] %vm408_vm0, %v1016_v25 }
 0x39e PF: > { %s19_s30 = sadd.s32 1, %s1302_s30  }
 0x39f   : > { %p16_p4 = scmp.ge.s32.totalorder %s19_s30, 4  }
 0x3a1   :  { %18 = sbr.rel (!%p16_p4) target bundleno = 1 (0x1), region = 86 }

</bundles_post_ra>
